<compile_context>
chip_gen: v7x
topology: tpu7x:2x2x1
jax: 0.10.0
libtpu: 0.0.40
codegen_flags: <defaults>
</compile_context>

<pallas_src>
import math
import functools

import jax
import jax.numpy as jnp
from jax import lax
from jax.experimental import pallas as pl
from jax.experimental.pallas import tpu as pltpu


# ----------------------------- fused kernel ---------------------------------

def fused_self_attention_kernel(x_ref, w_ref, b_ref, o_ref, *,
                                num_heads, scale, block_q):
    """One grid step = (batch b, query block qb).

    x_ref:  (1, S, H)   bf16  full sequence for this batch element (needed for K/V)
    w_ref:  (H, 3H)     bf16  packed, pre-transposed [Wq.T | Wk.T | Wv.T]
    b_ref:  (1, 2H)     f32   packed [bq | bv]  (bk dropped: cancels under softmax)
    o_ref:  (1, TQ, H)  f32   output rows for this query block
    """
    S = x_ref.shape[1]
    H = w_ref.shape[0]
    D = H // num_heads
    TQ = block_q

    q_start = pl.multiple_of(pl.program_id(1) * TQ, TQ)

    x_full = x_ref[0]                                    # (S, H)   bf16
    x_q = x_ref[0, pl.ds(q_start, TQ), :]                # (TQ, H)  bf16

    # K/V projection over the full sequence; Q projection only for this row block.
    # bf16 MXU operands, f32 accumulation.
    kv = jnp.dot(x_full, w_ref[:, H:], preferred_element_type=jnp.float32)   # (S, 2H) f32
    q_all = jnp.dot(x_q, w_ref[:, :H], preferred_element_type=jnp.float32)   # (TQ, H) f32

    # Fold bq and the 1/sqrt(D) scale into the small (TQ, H) Q block (never touch (TQ,S)).
    q_all = ((q_all + b_ref[0:1, :H]) * scale).astype(jnp.bfloat16)
    # bk is dropped: q.bk is constant across keys for each query row -> exact softmax no-op.
    k_all = kv[:, :H].astype(jnp.bfloat16)
    v_all = (kv[:, H:] + b_ref[0:1, H:]).astype(jnp.bfloat16)

    # TODO(synk): at BERT scale (NH=12, D=64, S~512) switch to a lax.fori_loop over head
    # *pairs* with head-pair-major weight packing so every per-head slice/store is
    # 128-lane aligned and each (TQ,S) score tile dies before the next iteration.
    for h in range(num_heads):                           # static unroll (small head count)
        sl = slice(h * D, (h + 1) * D)
        qh = q_all[:, sl]                                # (TQ, D) bf16, pre-scaled
        kh = k_all[:, sl]                                # (S,  D) bf16
        vh = v_all[:, sl]                                # (S,  D) bf16

        # q @ k^T via dot_general (contract dim 1 vs dim 1): no in-kernel transpose.
        scores = lax.dot_general(qh, kh, (((1,), (1,)), ((), ())),
                                 preferred_element_type=jnp.float32)          # (TQ, S) f32

        # Numerically stable softmax, kept in f32 (v5e VPU/EUP have no bf16).
        scores = scores - jnp.max(scores, axis=-1, keepdims=True)
        p = jnp.exp(scores)                              # unnormalized probs (TQ, S)
        denom = jnp.sum(p, axis=-1, keepdims=True)       # (TQ, 1)

        # Deferred normalization: divide the (TQ, D) context, not the (TQ, S) tile,
        # and route the reciprocal to the EUP slot.
        ctx = jnp.dot(p.astype(jnp.bfloat16), vh,
                      preferred_element_type=jnp.float32)                     # (TQ, D) f32
        ctx = ctx * pl.reciprocal(denom, approx=True)

        # TODO(synk): attention-probability dropout omitted (eval-mode identity in the ref).
        o_ref[0, :, sl] = jnp.tanh(ctx)                  # head-sliced write, no concat


# ----------------------------- wrapper ---------------------------------------

def self_attention_forward(x, params, num_heads, *, block_q=None):
    """Forward pass of the SelfAttention module (BertSelfAttention + tanh)."""
    B, S, H = x.shape
    assert H % num_heads == 0
    D = H // num_heads
    scale = 1.0 / math.sqrt(D)

    if block_q is None:
        block_q = min(S, 256)
    assert S % block_q == 0, "demo keeps S a multiple of block_q (pad in general)"
    num_q_blocks = S // block_q

    # Pack + pre-transpose the three nn.Linear weights once; bf16 MXU operands
    # (matmuls accumulate in f32 via preferred_element_type inside the kernel).
    w_qkv = jnp.concatenate(
        [params["wq"].T, params["wk"].T, params["wv"].T], axis=1).astype(jnp.bfloat16)
    # Pack only [bq | bv]; bk shifts each score row by a constant and cancels in softmax.
    b_qv = jnp.concatenate(
        [params["bq"], params["bv"]]).reshape(1, 2 * H).astype(jnp.float32)

    x_bf16 = x.astype(jnp.bfloat16)   # halves the activation DMA

    kernel = functools.partial(fused_self_attention_kernel,
                               num_heads=num_heads, scale=scale, block_q=block_q)

    return pl.pallas_call(
        kernel,
        out_shape=jax.ShapeDtypeStruct((B, S, H), jnp.float32),
        grid_spec=pltpu.PrefetchScalarGridSpec(
            num_scalar_prefetch=0,
            grid=(B, num_q_blocks),        # batch x query-row blocks: >=2 parallel units
            in_specs=[
                pl.BlockSpec((1, S, H), lambda b, qb: (b, 0, 0)),
                # Grid-invariant weight/bias: constant index map -> never re-DMA'd.
                # TODO(synk): at BERT scale mark these pipeline_mode=pl.Buffered(1)
                # (or whole-array VMEM residency) so they are not double-buffered.
                pl.BlockSpec((H, 3 * H), lambda b, qb: (0, 0)),
                pl.BlockSpec((1, 2 * H), lambda b, qb: (0, 0)),
            ],
            out_specs=pl.BlockSpec((1, block_q, H), lambda b, qb: (b, qb, 0)),
        ),
        compiler_params=pltpu.CompilerParams(
            dimension_semantics=("parallel", "parallel"),
            vmem_limit_bytes=32 * 1024 * 1024),
    )(x_bf16, w_qkv, b_qv)


# ----------------------------- reference (pure JAX) --------------------------

def reference_forward(x, params, num_heads):
    B, S, H = x.shape
    D = H // num_heads
    q = x @ params["wq"].T + params["bq"]
    k = x @ params["wk"].T + params["bk"]
    v = x @ params["wv"].T + params["bv"]

    def heads(t):
        return t.reshape(B, S, num_heads, D).transpose(0, 2, 1, 3)

    q, k, v = heads(q), heads(k), heads(v)
    mask = jnp.zeros((B, 1, 1, S), jnp.float32)          # zero_tensor from the module
    scores = jnp.einsum("bhqd,bhkd->bhqk", q, k) / math.sqrt(D) + mask
    probs = jax.nn.softmax(scores, axis=-1)
    ctx = jnp.einsum("bhqk,bhkd->bhqd", probs, v)
    ctx = ctx.transpose(0, 2, 1, 3).reshape(B, S, H)
    return jnp.tanh(ctx)


# ----------------------------- main ------------------------------------------

if __name__ == "__main__":
    B, S, H, NH = 2, 16, 32, 4   # batch, max_seq_len, hidden_size, num_attention_heads

    key = jax.random.PRNGKey(0)
    kx, kq, kk, kv, kbq, kbk, kbv = jax.random.split(key, 7)

    x = jax.random.normal(kx, (B, S, H), dtype=jnp.float32)
    params = {
        "wq": 0.02 * jax.random.normal(kq, (H, H), dtype=jnp.float32),
        "wk": 0.02 * jax.random.normal(kk, (H, H), dtype=jnp.float32),
        "wv": 0.02 * jax.random.normal(kv, (H, H), dtype=jnp.float32),
        "bq": 0.02 * jax.random.normal(kbq, (H,), dtype=jnp.float32),
        "bk": 0.02 * jax.random.normal(kbk, (H,), dtype=jnp.float32),
        "bv": 0.02 * jax.random.normal(kbv, (H,), dtype=jnp.float32),
    }

    # block_q=8 exercises the query-row grid axis (2 blocks per batch element).
    out = self_attention_forward(x, params, NH, block_q=8)
    out = jax.block_until_ready(out)

    ref = reference_forward(x, params, NH)
    assert out.shape == (B, S, H), out.shape
    # bf16 MXU operands + approx reciprocal -> loosened tolerance vs the f32 reference.
    assert jnp.allclose(out, ref, atol=2e-2, rtol=2e-2), (
        "mismatch vs JAX reference; max abs err = %g"
        % float(jnp.max(jnp.abs(out - ref))))

    print("KERNEL_OK")
</pallas_src>

<mosaic_0001>
module attributes {stable_mosaic.version = 11 : i64} {
  func.func @fused_self_attention_kernel(%arg0: i32, %arg1: i32, %arg2: memref<1x16x32xbf16, #tpu.memory_space<vmem>>, %arg3: memref<32x96xbf16, #tpu.memory_space<vmem>>, %arg4: memref<1x64xf32, #tpu.memory_space<vmem>>, %arg5: memref<1x8x32xf32, #tpu.memory_space<vmem>>) attributes {dimension_semantics = [#tpu.dimension_semantics<parallel>, #tpu.dimension_semantics<parallel>], iteration_bounds = array<i64: 2, 2>, scalar_prefetch = 0 : i64, scratch_operands = 0 : i64, tpu.core_type = #tpu.core_type<tc>, window_params = [{transform_indices = @transform_0, window_bounds = array<i64: 1, 16, 32>}, {pipeline_mode = #tpu.pipeline_mode<synchronous>, transform_indices = @transform_1, window_bounds = array<i64: 32, 96>}, {pipeline_mode = #tpu.pipeline_mode<synchronous>, transform_indices = @transform_2, window_bounds = array<i64: 1, 64>}, {transform_indices = @transform_3, window_bounds = array<i64: 1, 8, 32>}]} {
    %c8_i32 = arith.constant 8 : i32
    %0 = arith.muli %arg1, %c8_i32 : i32
    %1 = tpu.assume_multiple %0, 8 : i32
    %c0 = arith.constant 0 : index
    %c0_0 = arith.constant 0 : index
    %c0_1 = arith.constant 0 : index
    %2 = vector.load %arg2[%c0, %c0_0, %c0_1] : memref<1x16x32xbf16, #tpu.memory_space<vmem>>, vector<1x16x32xbf16>
    %3 = vector.shape_cast %2 : vector<1x16x32xbf16> to vector<16x32xbf16>
    %c0_2 = arith.constant 0 : index
    %4 = arith.index_cast %1 : i32 to index
    %c0_3 = arith.constant 0 : index
    %5 = vector.load %arg2[%c0_2, %4, %c0_3] : memref<1x16x32xbf16, #tpu.memory_space<vmem>>, vector<1x8x32xbf16>
    %6 = vector.shape_cast %5 : vector<1x8x32xbf16> to vector<8x32xbf16>
    %c0_4 = arith.constant 0 : index
    %c32 = arith.constant 32 : index
    %7 = vector.load %arg3[%c0_4, %c32] : memref<32x96xbf16, #tpu.memory_space<vmem>>, vector<32x64xbf16>
    %cst = arith.constant dense<0.000000e+00> : vector<16x64xf32>
    %8 = tpu.matmul %3, %7, %cst {dimension_numbers = #tpu.dot_dimension_numbers<[1], [0], [0], [1], [0, 0, 1, 1], [], []>} : vector<16x32xbf16>, vector<32x64xbf16>, vector<16x64xf32> -> vector<16x64xf32>
    %c0_5 = arith.constant 0 : index
    %c0_6 = arith.constant 0 : index
    %9 = vector.load %arg3[%c0_5, %c0_6] : memref<32x96xbf16, #tpu.memory_space<vmem>>, vector<32x32xbf16>
    %cst_7 = arith.constant dense<0.000000e+00> : vector<8x32xf32>
    %10 = tpu.matmul %6, %9, %cst_7 {dimension_numbers = #tpu.dot_dimension_numbers<[1], [0], [0], [1], [0, 0, 1, 1], [], []>} : vector<8x32xbf16>, vector<32x32xbf16>, vector<8x32xf32> -> vector<8x32xf32>
    %c0_8 = arith.constant 0 : index
    %c0_9 = arith.constant 0 : index
    %11 = vector.load %arg4[%c0_8, %c0_9] : memref<1x64xf32, #tpu.memory_space<vmem>>, vector<1x32xf32>
    %12 = vector.broadcast %11 : vector<1x32xf32> to vector<8x32xf32>
    %13 = arith.addf %10, %12 : vector<8x32xf32>
    %cst_10 = arith.constant 0.353553385 : f32
    %14 = vector.broadcast %cst_10 : f32 to vector<8x32xf32>
    %15 = arith.mulf %13, %14 : vector<8x32xf32>
    %16 = arith.truncf %15 : vector<8x32xf32> to vector<8x32xbf16>
    %17 = vector.extract_strided_slice %8 {offsets = [0, 0], sizes = [16, 32], strides = [1, 1]} : vector<16x64xf32> to vector<16x32xf32>
    %18 = arith.truncf %17 : vector<16x32xf32> to vector<16x32xbf16>
    %19 = vector.extract_strided_slice %8 {offsets = [0, 32], sizes = [16, 32], strides = [1, 1]} : vector<16x64xf32> to vector<16x32xf32>
    %c0_11 = arith.constant 0 : index
    %c32_12 = arith.constant 32 : index
    %20 = vector.load %arg4[%c0_11, %c32_12] : memref<1x64xf32, #tpu.memory_space<vmem>>, vector<1x32xf32>
    %21 = vector.broadcast %20 : vector<1x32xf32> to vector<16x32xf32>
    %22 = arith.addf %19, %21 : vector<16x32xf32>
    %23 = arith.truncf %22 : vector<16x32xf32> to vector<16x32xbf16>
    %24 = vector.extract_strided_slice %16 {offsets = [0, 0], sizes = [8, 8], strides = [1, 1]} : vector<8x32xbf16> to vector<8x8xbf16>
    %25 = vector.extract_strided_slice %18 {offsets = [0, 0], sizes = [16, 8], strides = [1, 1]} : vector<16x32xbf16> to vector<16x8xbf16>
    %26 = vector.extract_strided_slice %23 {offsets = [0, 0], sizes = [16, 8], strides = [1, 1]} : vector<16x32xbf16> to vector<16x8xbf16>
    %cst_13 = arith.constant dense<0.000000e+00> : vector<8x16xf32>
    %27 = tpu.matmul %24, %25, %cst_13 {dimension_numbers = #tpu.dot_dimension_numbers<[1], [1], [0], [0], [0, 0, 1, 0], [], []>} : vector<8x8xbf16>, vector<16x8xbf16>, vector<8x16xf32> -> vector<8x16xf32>
    %cst_14 = arith.constant dense<0xFF800000> : vector<8xf32>
    %28 = vector.multi_reduction <maximumf>, %27, %cst_14 [1] : vector<8x16xf32> to vector<8xf32>
    %29 = vector.shape_cast %28 : vector<8xf32> to vector<8x1xf32>
    %30 = vector.broadcast %29 : vector<8x1xf32> to vector<8x16xf32>
    %31 = arith.subf %27, %30 : vector<8x16xf32>
    %32 = math.exp %31 : vector<8x16xf32>
    %cst_15 = arith.constant dense<0.000000e+00> : vector<8xf32>
    %33 = vector.multi_reduction <add>, %32, %cst_15 [1] : vector<8x16xf32> to vector<8xf32>
    %34 = vector.shape_cast %33 : vector<8xf32> to vector<8x1xf32>
    %35 = arith.truncf %32 : vector<8x16xf32> to vector<8x16xbf16>
    %cst_16 = arith.constant dense<0.000000e+00> : vector<8x8xf32>
    %36 = tpu.matmul %35, %26, %cst_16 {dimension_numbers = #tpu.dot_dimension_numbers<[1], [0], [0], [1], [0, 0, 1, 1], [], []>} : vector<8x16xbf16>, vector<16x8xbf16>, vector<8x8xf32> -> vector<8x8xf32>
    %37 = tpu.reciprocal %34 {approx = true} : vector<8x1xf32> -> vector<8x1xf32>
    %38 = vector.broadcast %37 : vector<8x1xf32> to vector<8x8xf32>
    %39 = arith.mulf %36, %38 : vector<8x8xf32>
    %40 = math.tanh %39 : vector<8x8xf32>
    %c0_17 = arith.constant 0 : index
    %c0_18 = arith.constant 0 : index
    %c0_19 = arith.constant 0 : index
    %41 = vector.load %arg5[%c0_17, %c0_18, %c0_19] : memref<1x8x32xf32, #tpu.memory_space<vmem>>, vector<1x8x8xf32>
    %42 = vector.shape_cast %41 : vector<1x8x8xf32> to vector<8x8xf32>
    %43 = vector.shape_cast %40 : vector<8x8xf32> to vector<1x8x8xf32>
    tpu.vector_store %arg5[%c0_17, %c0_18, %c0_19], %43 {strides = array<i32>} : memref<1x8x32xf32, #tpu.memory_space<vmem>>, vector<1x8x8xf32>,
    %44 = vector.extract_strided_slice %16 {offsets = [0, 8], sizes = [8, 8], strides = [1, 1]} : vector<8x32xbf16> to vector<8x8xbf16>
    %45 = vector.extract_strided_slice %18 {offsets = [0, 8], sizes = [16, 8], strides = [1, 1]} : vector<16x32xbf16> to vector<16x8xbf16>
    %46 = vector.extract_strided_slice %23 {offsets = [0, 8], sizes = [16, 8], strides = [1, 1]} : vector<16x32xbf16> to vector<16x8xbf16>
    %cst_20 = arith.constant dense<0.000000e+00> : vector<8x16xf32>
    %47 = tpu.matmul %44, %45, %cst_20 {dimension_numbers = #tpu.dot_dimension_numbers<[1], [1], [0], [0], [0, 0, 1, 0], [], []>} : vector<8x8xbf16>, vector<16x8xbf16>, vector<8x16xf32> -> vector<8x16xf32>
    %cst_21 = arith.constant dense<0xFF800000> : vector<8xf32>
    %48 = vector.multi_reduction <maximumf>, %47, %cst_21 [1] : vector<8x16xf32> to vector<8xf32>
    %49 = vector.shape_cast %48 : vector<8xf32> to vector<8x1xf32>
    %50 = vector.broadcast %49 : vector<8x1xf32> to vector<8x16xf32>
    %51 = arith.subf %47, %50 : vector<8x16xf32>
    %52 = math.exp %51 : vector<8x16xf32>
    %cst_22 = arith.constant dense<0.000000e+00> : vector<8xf32>
    %53 = vector.multi_reduction <add>, %52, %cst_22 [1] : vector<8x16xf32> to vector<8xf32>
    %54 = vector.shape_cast %53 : vector<8xf32> to vector<8x1xf32>
    %55 = arith.truncf %52 : vector<8x16xf32> to vector<8x16xbf16>
    %cst_23 = arith.constant dense<0.000000e+00> : vector<8x8xf32>
    %56 = tpu.matmul %55, %46, %cst_23 {dimension_numbers = #tpu.dot_dimension_numbers<[1], [0], [0], [1], [0, 0, 1, 1], [], []>} : vector<8x16xbf16>, vector<16x8xbf16>, vector<8x8xf32> -> vector<8x8xf32>
    %57 = tpu.reciprocal %54 {approx = true} : vector<8x1xf32> -> vector<8x1xf32>
    %58 = vector.broadcast %57 : vector<8x1xf32> to vector<8x8xf32>
    %59 = arith.mulf %56, %58 : vector<8x8xf32>
    %60 = math.tanh %59 : vector<8x8xf32>
    %c0_24 = arith.constant 0 : index
    %c0_25 = arith.constant 0 : index
    %c8 = arith.constant 8 : index
    %61 = vector.load %arg5[%c0_24, %c0_25, %c8] : memref<1x8x32xf32, #tpu.memory_space<vmem>>, vector<1x8x8xf32>
    %62 = vector.shape_cast %61 : vector<1x8x8xf32> to vector<8x8xf32>
    %63 = vector.shape_cast %60 : vector<8x8xf32> to vector<1x8x8xf32>
    tpu.vector_store %arg5[%c0_24, %c0_25, %c8], %63 {strides = array<i32>} : memref<1x8x32xf32, #tpu.memory_space<vmem>>, vector<1x8x8xf32>,
    %64 = vector.extract_strided_slice %16 {offsets = [0, 16], sizes = [8, 8], strides = [1, 1]} : vector<8x32xbf16> to vector<8x8xbf16>
    %65 = vector.extract_strided_slice %18 {offsets = [0, 16], sizes = [16, 8], strides = [1, 1]} : vector<16x32xbf16> to vector<16x8xbf16>
    %66 = vector.extract_strided_slice %23 {offsets = [0, 16], sizes = [16, 8], strides = [1, 1]} : vector<16x32xbf16> to vector<16x8xbf16>
    %cst_26 = arith.constant dense<0.000000e+00> : vector<8x16xf32>
    %67 = tpu.matmul %64, %65, %cst_26 {dimension_numbers = #tpu.dot_dimension_numbers<[1], [1], [0], [0], [0, 0, 1, 0], [], []>} : vector<8x8xbf16>, vector<16x8xbf16>, vector<8x16xf32> -> vector<8x16xf32>
    %cst_27 = arith.constant dense<0xFF800000> : vector<8xf32>
    %68 = vector.multi_reduction <maximumf>, %67, %cst_27 [1] : vector<8x16xf32> to vector<8xf32>
    %69 = vector.shape_cast %68 : vector<8xf32> to vector<8x1xf32>
    %70 = vector.broadcast %69 : vector<8x1xf32> to vector<8x16xf32>
    %71 = arith.subf %67, %70 : vector<8x16xf32>
    %72 = math.exp %71 : vector<8x16xf32>
    %cst_28 = arith.constant dense<0.000000e+00> : vector<8xf32>
    %73 = vector.multi_reduction <add>, %72, %cst_28 [1] : vector<8x16xf32> to vector<8xf32>
    %74 = vector.shape_cast %73 : vector<8xf32> to vector<8x1xf32>
    %75 = arith.truncf %72 : vector<8x16xf32> to vector<8x16xbf16>
    %cst_29 = arith.constant dense<0.000000e+00> : vector<8x8xf32>
    %76 = tpu.matmul %75, %66, %cst_29 {dimension_numbers = #tpu.dot_dimension_numbers<[1], [0], [0], [1], [0, 0, 1, 1], [], []>} : vector<8x16xbf16>, vector<16x8xbf16>, vector<8x8xf32> -> vector<8x8xf32>
    %77 = tpu.reciprocal %74 {approx = true} : vector<8x1xf32> -> vector<8x1xf32>
    %78 = vector.broadcast %77 : vector<8x1xf32> to vector<8x8xf32>
    %79 = arith.mulf %76, %78 : vector<8x8xf32>
    %80 = math.tanh %79 : vector<8x8xf32>
    %c0_30 = arith.constant 0 : index
    %c0_31 = arith.constant 0 : index
    %c16 = arith.constant 16 : index
    %81 = vector.load %arg5[%c0_30, %c0_31, %c16] : memref<1x8x32xf32, #tpu.memory_space<vmem>>, vector<1x8x8xf32>
    %82 = vector.shape_cast %81 : vector<1x8x8xf32> to vector<8x8xf32>
    %83 = vector.shape_cast %80 : vector<8x8xf32> to vector<1x8x8xf32>
    tpu.vector_store %arg5[%c0_30, %c0_31, %c16], %83 {strides = array<i32>} : memref<1x8x32xf32, #tpu.memory_space<vmem>>, vector<1x8x8xf32>,
    %84 = vector.extract_strided_slice %16 {offsets = [0, 24], sizes = [8, 8], strides = [1, 1]} : vector<8x32xbf16> to vector<8x8xbf16>
    %85 = vector.extract_strided_slice %18 {offsets = [0, 24], sizes = [16, 8], strides = [1, 1]} : vector<16x32xbf16> to vector<16x8xbf16>
    %86 = vector.extract_strided_slice %23 {offsets = [0, 24], sizes = [16, 8], strides = [1, 1]} : vector<16x32xbf16> to vector<16x8xbf16>
    %cst_32 = arith.constant dense<0.000000e+00> : vector<8x16xf32>
    %87 = tpu.matmul %84, %85, %cst_32 {dimension_numbers = #tpu.dot_dimension_numbers<[1], [1], [0], [0], [0, 0, 1, 0], [], []>} : vector<8x8xbf16>, vector<16x8xbf16>, vector<8x16xf32> -> vector<8x16xf32>
    %cst_33 = arith.constant dense<0xFF800000> : vector<8xf32>
    %88 = vector.multi_reduction <maximumf>, %87, %cst_33 [1] : vector<8x16xf32> to vector<8xf32>
    %89 = vector.shape_cast %88 : vector<8xf32> to vector<8x1xf32>
    %90 = vector.broadcast %89 : vector<8x1xf32> to vector<8x16xf32>
    %91 = arith.subf %87, %90 : vector<8x16xf32>
    %92 = math.exp %91 : vector<8x16xf32>
    %cst_34 = arith.constant dense<0.000000e+00> : vector<8xf32>
    %93 = vector.multi_reduction <add>, %92, %cst_34 [1] : vector<8x16xf32> to vector<8xf32>
    %94 = vector.shape_cast %93 : vector<8xf32> to vector<8x1xf32>
    %95 = arith.truncf %92 : vector<8x16xf32> to vector<8x16xbf16>
    %cst_35 = arith.constant dense<0.000000e+00> : vector<8x8xf32>
    %96 = tpu.matmul %95, %86, %cst_35 {dimension_numbers = #tpu.dot_dimension_numbers<[1], [0], [0], [1], [0, 0, 1, 1], [], []>} : vector<8x16xbf16>, vector<16x8xbf16>, vector<8x8xf32> -> vector<8x8xf32>
    %97 = tpu.reciprocal %94 {approx = true} : vector<8x1xf32> -> vector<8x1xf32>
    %98 = vector.broadcast %97 : vector<8x1xf32> to vector<8x8xf32>
    %99 = arith.mulf %96, %98 : vector<8x8xf32>
    %100 = math.tanh %99 : vector<8x8xf32>
    %c0_36 = arith.constant 0 : index
    %c0_37 = arith.constant 0 : index
    %c24 = arith.constant 24 : index
    %101 = vector.load %arg5[%c0_36, %c0_37, %c24] : memref<1x8x32xf32, #tpu.memory_space<vmem>>, vector<1x8x8xf32>
    %102 = vector.shape_cast %101 : vector<1x8x8xf32> to vector<8x8xf32>
    %103 = vector.shape_cast %100 : vector<8x8xf32> to vector<1x8x8xf32>
    tpu.vector_store %arg5[%c0_36, %c0_37, %c24], %103 {strides = array<i32>} : memref<1x8x32xf32, #tpu.memory_space<vmem>>, vector<1x8x8xf32>,
    return
  }
  func.func @transform_0(%arg0: i32, %arg1: i32) -> (i32, i32, i32) {
    %c0_i32 = arith.constant 0 : i32
    %c0_i32_0 = arith.constant 0 : i32
    %c0_i32_1 = arith.constant 0 : i32
    return %arg0, %c0_i32, %c0_i32_0 : i32, i32, i32
  }
  func.func @transform_1(%arg0: i32, %arg1: i32) -> (i32, i32) {
    %c0_i32 = arith.constant 0 : i32
    %c0_i32_0 = arith.constant 0 : i32
    %c0_i32_1 = arith.constant 0 : i32
    return %c0_i32, %c0_i32_0 : i32, i32
  }
  func.func @transform_2(%arg0: i32, %arg1: i32) -> (i32, i32) {
    %c0_i32 = arith.constant 0 : i32
    %c0_i32_0 = arith.constant 0 : i32
    %c0_i32_1 = arith.constant 0 : i32
    return %c0_i32, %c0_i32_0 : i32, i32
  }
  func.func @transform_3(%arg0: i32, %arg1: i32) -> (i32, i32, i32) {
    %c0_i32 = arith.constant 0 : i32
    %c0_i32_0 = arith.constant 0 : i32
    return %arg0, %arg1, %c0_i32 : i32, i32, i32
  }
}

</mosaic_0001>

<bundles_post_ra>
// kernel: tpu_custom_call.1
= control target key start
LH: loop header
LB: loop body
LE: loop exit
PB: predicated region body
PF: predicated region fallthrough
CT: control target
= control target key end

     0   :  { %s1770_s0 = inlined_call_operand.hbm [shape: bf16[2,16,32], index: 0, kind: input, shape index: {}]   ;;  %s1771_s1 = inlined_call_operand.hbm [shape: bf16[32,96], index: 1, kind: input, shape index: {}]   ;;  %s1772_s2 = inlined_call_operand.vmem [shape: f32[1,64], index: 2, kind: input, shape index: {}]   ;;  %s1773_s3 = inlined_call_operand.hbm [shape: f32[2,16,32], index: 3, kind: output, shape index: {}]  }
   0x1   :  { %1786 = sst [smem:[#allocation16_spill]] %s1771_s1 }
   0x2   :  { %8 = vsyncpa [#allocation3], 0 }
   0x3   :  { %10 = vsyncpa [#allocation3 + $0x1], 0 }
   0x4   :  { %11 = vsyncpa [#allocation6], 0 }
   0x5   :  { %12 = vsyncpa [#allocation4], 0 }
   0x6   :  { %14 = vsyncpa [#allocation4 + $0x1], 0  ;;  %s1419_s12 = smov 0   ;;  %s1421_s13 = smov 0  }
   0x7   :  { %s1423_s14 = smov 0   ;;  %s1425_s15 = smov 0  }
   0x8   :  { %s1427_s16 = smov 0   ;;  %s1429_s17 = smov 0  }
   0x9   :  { %s1431_s18 = smov 0   ;;  %s1433_s19 = smov 0  }
   0xa   :  { %s1435_s20 = smov 0   ;;  %s1437_s21 = smov 0  }
   0xb   :  { %s1439_s22 = smov 0  }
   0xc LB: > { %1787 = sst [smem:[#allocation11_spill]] %s1340_s12  ;;  %s922_s23 = sadd.s32 4294967295, %s1380_s22   ;;  %s1380_s22 = sphi %s1439_s22, %s20_s22   ;;  %s1376_s21 = sphi %s1437_s21, %s1820_s21   ;;  %s1372_s20 = sphi %s1435_s20, %s1811_s20   ;;  %s1368_s19 = sphi %s1433_s19, %s1819_s19   ;;  %s1364_s18 = sphi %s1431_s18, %s1810_s18   ;;  %s1360_s17 = sphi %s1429_s17, %s1818_s17   ;;  %s1356_s16 = sphi %s1427_s16, %s1817_s16   ;;  %s1352_s15 = sphi %s1425_s15, %s1816_s15   ;;  %s1348_s14 = sphi %s1423_s14, %s1815_s14   ;;  %s1344_s13 = sphi %s1421_s13, %s1814_s13   ;;  %s1340_s12 = sphi %s1419_s12, %s1813_s12  }
   0xd   : > { %1788 = sst [smem:[#allocation12_spill]] %s1372_s20  ;;  %s923_s24 = sadd.s32 4294967294, %s1380_s22  }
   0xe   : > { %p52_p0 = scmp.ne.s32.totalorder %s1356_s16, %s1352_s15  ;;  %p1475_p1 = scmp.eq.s32.totalorder %s922_s23, 0 }
   0xf   : > { %s109_s26 = sadd.s32 1, %s1348_s14  ;;  %p119_p2 = scmp.ne.s32.totalorder %s1348_s14, %s1344_s13 }
  0x10   : > { %s1789_s25 = scalar_select %p1475_p1, 1, 0 }
  0x11   : > { %p1484_p3 = por %p1475_p1, %p52_p0  ;;  %p120_p4 = scmp.eq.s32.totalorder %s922_s23, 3 }
  0x12   : > { %p125_p5 = scmp.ne.s32.totalorder %s1344_s13, %s1340_s12  ;;  %p126_p6 = scmp.eq.s32.totalorder %s923_s24, 3 }
  0x13   : > { %s1790_s27 = scalar_select %p1484_p3, 1, 0 }
  0x14   : > { %p1490_p7 = por %p120_p4, %p119_p2  ;;  %p924_p8 = scmp.ge.s32.totalorder %s1380_s22, 1 }
  0x15   : > { %p1495_p9 = por %p126_p6, %p125_p5  ;;  %p133_p10 = scmp.lt.s32.totalorder %s1380_s22, 5 }
  0x16   : > { %s1791_s28 = scalar_select %p1490_p7, 1, 0 }
  0x17   : > { %s1792_s29 = scalar_select %p1495_p9, 1, 0 }
  0x18   : > { %p1500_p11 = pnand %p924_p8, %p133_p10  ;;  %s1382_s4 = smov [#allocation5]  }
  0x19   : > { %1793 = sst [smem:[#allocation13_spill]] %s1792_s29  ;;  %s145_s5 = sshll.u32 %s1382_s4, 4  ;;  %s146_s5 = int_to_ptr.vmem [resolvable:$true] %s145_s5 }
  0x1a   : > { %s1794_s30 = scalar_select %p1500_p11, 1, 0 }
  0x1b   : > { %p1050_p12 = pneg %p1500_p11  ;;  %s1796_s1 = sld [smem:[#allocation16_spill]] }
  0x1d   : > { %p1508_p13 = pnand %p1050_p12, %p1475_p1 }
  0x1f   : > { %p1198_p2 = pneg %p1508_p13 }
  0x21   : > { %s1196_s9 = scalar_lea.hbm %s1796_s1, 256 }
  0x22   : > { %p1197_p0 = scmp.ne.s32.totalorder %s1796_s1, %s1196_s9  ;;  %p1203_p6 = scmp.lt.u32.totalorder %s1196_s9, %s1796_s1 }
  0x24   : > { %p1199_p4 = pnand %p1198_p2, %p1197_p0 }
  0x26   : > { %p1200_p5 = pneg %p1199_p4 }
  0x28   : > { %p1205_p8 = pnand %p1203_p6, %p1200_p5 }
  0x2a   : > { %1208 = shalt.err (!%p1205_p8)
}
  0x2b   : > { %s1209_s24 = scalar_lea.vmem %s146_s5, 256  ;;  %p1217_p7 = scmp.lt.s32.totalorder %s146_s5, %s146_s5 }
  0x2c   : > { %p1210_p10 = scmp.ne.s32.totalorder %s146_s5, %s1209_s24  ;;  %p1218_p1 = scmp.lt.s32.totalorder %s1209_s24, %s1209_s24 }
  0x2e   : > { %p1212_p12 = pnand %p1210_p10, %p1198_p2  ;;  %p1219_p3 = por %p1218_p1, %p1217_p7 }
  0x30   : > { %p1213_p9 = pneg %p1212_p12 }
  0x32   : > { %p1220_p11 = pnand %p1219_p3, %p1213_p9 }
  0x34   : > { %1223 = shalt.err (!%p1220_p11)
}
  0x35   : > { %s1779_s4 = smov 64   ;;  %s1780_s7 = smov 4  }
  0x36   : > { %1053 = dma.hbm_to_vmem [thread:$0]  (!%p1508_p13), %s1796_s1, 256, %s146_s5, [#allocation6], %s1779_s4, %s1779_s4, %s1780_s7  }
  0x37   : > { %s29_s10 = sadd.s32 1, %s1372_s20  ;;  %s32_s11 = sadd.s32 1, %s1376_s21 }
  0x38   : > { %p30_p1 = scmp.ge.s32.totalorder %s29_s10, 2  ;;  %s39_s15 = sadd.s32 1, %s1360_s17 }
  0x39   : > { %p46_p3 = scmp.ne.s32.totalorder %s1360_s17, %s1356_s16  ;;  %p47_p7 = scmp.eq.s32.totalorder %s1380_s22, 0 }
  0x3a   : > { %s1822_s10 = smov (%p30_p1, %s29_s10), 0  ;;  %s1824_s11 = smov (!%p30_p1, %s32_s11), %s1376_s21 }
  0x3b   : > { %1797 = sst [smem:[#allocation14_spill]] %s1822_s10  ;;  %s105_s6 = ssub.s32 %s1372_s20, %s1822_s10 }
  0x3c   : > { %p34_p9 = scmp.ge.s32.totalorder %s1824_s11, 2  ;;  %p1063_p11 = scmp.lt.s32.totalorder %s1380_s22, 4 }
  0x3d   : > { %p1543_p13 = por %p47_p7, %p46_p3  ;;  %s162_s23 = sand.u32 1, %s1360_s17  }
  0x3e   : > { %s1826_s11 = smov (%p34_p9, %s1824_s11), 0  ;;  %s927_s24 = sshll.u32 %s162_s23, 3 }
  0x3f   : > { %1799 = sst [smem:[#allocation15_spill]] %s1826_s11  ;;  %s36_s8 = ssub.s32 %s1376_s21, %s1826_s11 }
  0x40   : > { %p37_p0 = scmp.eq.s32.totalorder %s36_s8, 0  ;;  %s106_s9 = sor.u32 %s105_s6, %s36_s8 }
  0x41   : > { %p107_p2 = scmp.eq.s32.totalorder %s106_s9, 0  ;;  %s955_s4 = sshll.u32 %s1376_s21, 7 }
  0x42   : > { %s1554_s7 = scalar_select %p37_p0, %s1360_s17, %s39_s15  }
  0x43   : > { %s1559_s1 = scalar_select %p107_p2, %s1348_s14, %s109_s26  }
  0x44   : > { %s1564_s29 = scalar_lea.hbm %s1770_s0, %s955_s4  ;;  %s166_s12 = scalar_lea.vmem [#allocation2], %s927_s24 }
  0x45   : > { %s173_s11 = sshll.u32 %s166_s12, 4  ;;  %p1572_p4 = pnand %p1063_p11, %p1543_p13  ;;  %s1566_s11 = int_to_ptr.vmem [resolvable:$true] %s173_s11 }
  0x46   : > { %s1576_s26 = scalar_lea.sflag [#allocation3], %s162_s23  ;;  %s1224_s20 = scalar_lea.hbm %s1564_s29, 128 }
  0x47   : > { %p1225_p5 = scmp.ne.s32.totalorder %s1564_s29, %s1224_s20  ;;  %p1226_p6 = pneg %p1572_p4 }
  0x48   : > { %s1229_s10 = scalar_lea.hbm %s1770_s0, 256  ;;  %p1230_p12 = scmp.lt.u32.totalorder %s1564_s29, %s1770_s0 }
  0x49   : > { %p1227_p8 = pnand %p1226_p6, %p1225_p5  ;;  %p1231_p1 = scmp.lt.u32.totalorder %s1229_s10, %s1224_s20 }
  0x4a   : > { %p1233_p7 = scmp.lt.u32.totalorder %s1224_s20, %s1564_s29 }
  0x4b   : > { %p1228_p10 = pneg %p1227_p8  ;;  %p1232_p3 = por %p1231_p1, %p1230_p12 }
  0x4d   : > { %p1234_p9 = por %p1233_p7, %p1232_p3 }
  0x4f   : > { %p1235_p11 = pnand %p1234_p9, %p1228_p10 }
  0x51   : > { %1238 = shalt.err (!%p1235_p11)
}
  0x52   : > { %s1239_s23 = scalar_lea.vmem %s1566_s11, 128  ;;  %s1385_s24 = smov [#allocation2]  }
  0x53   : > { %p1240_p13 = scmp.ne.s32.totalorder %s1566_s11, %s1239_s23  ;;  %s1244_s8 = sshll.u32 %s1385_s24, 4  ;;  %s1245_s8 = int_to_ptr.vmem [resolvable:$false] %s1244_s8 }
  0x54   : > { %s1246_s9 = scalar_lea.vmem %s1245_s8, 256  ;;  %p1247_p5 = scmp.lt.s32.totalorder %s1566_s11, %s1245_s8 }
  0x55   : > { %p1242_p0 = pnand %p1240_p13, %p1226_p6  ;;  %p1248_p8 = scmp.lt.s32.totalorder %s1246_s9, %s1239_s23 }
  0x57   : > { %p1243_p2 = pneg %p1242_p0  ;;  %p1249_p12 = por %p1248_p8, %p1247_p5 }
  0x59   : > { %p1250_p1 = pnand %p1249_p12, %p1243_p2 }
  0x5b   : > { %1253 = shalt.err (!%p1250_p1)
}
  0x5c   : > { %s1801_s20 = smov 4   ;;  %s1802_s12 = smov 64  }
  0x5d   : > { %1057 = dma.hbm_to_vmem [thread:$0]  (!%p1572_p4), %s1564_s29, 128, %s1566_s11, %s1576_s26, %s1802_s12, %s1802_s12, %s1801_s20  }
  0x5e   : > { %p1803_p6 = scmp.ne.s32.totalorder %s1794_s30, 0 }
  0x5f   : > { %s187_s4 = sand.u32 (!%p1803_p6), 1, %s1356_s16   ;;  %p1804_p10 = scmp.ne.s32.totalorder (!%p1803_p6), %s1790_s27, 0 }
  0x60   : > { %185 = sbr.rel (%p1803_p6) target bundleno = 1319 (0x527), region = 32  ;;  %s1610_s10 = sshll.u32 (!%p1803_p6), %s187_s4, 3 }
  0x61   : > { %s188_s6 = scalar_lea.sflag (!%p1803_p6), [#allocation3], %s187_s4  ;;  %s191_s5 = scalar_lea.vmem (!%p1803_p6), [#allocation2], %s1610_s10 }
  0x67   : > { %1327 = dma.done.wait (%p1804_p10), %s188_s6, 128  }
  0x68   : > { %1329 = vsyncadd (%p1804_p10), %s188_s6, 4294967168  ;;  %p1805_p3 = scmp.ne.s32.totalorder %s1789_s25, 0 }
  0x6a   : > { %1331 = dma.done.wait (%p1805_p3), [#allocation6], 256  }
  0x6b   : > { %1333 = vsyncadd (%p1805_p3), [#allocation6], 4294967040  ;;  %v1386_v0 = vmov 0.0   ;;  %s934_s29 = sshll.u32 %s1364_s18, 3  ;;  %vm1387_vm0 = vmmov 0   ;;  %v1169_v1 = vld [vmem:[#allocation5] sm:$0xff]  }
  0x6c   : > { %978 = vmatprep.subr.bf16.mxu0 %v1386_v0  ;;  %986 = vmatprep.subr.bf16.mxu1 %v1386_v0  ;;  %s222_s27 = sshra.s32 %s934_s29, 3  ;;  %s1388_s25 = smov 96   ;;  %v1170_v2 = vld [vmem:[#allocation5 + $0x8] sm:$0xff]   ;;  %vm252_vm1 = vcmask 261120   ;;  %v1171_v6 = vld [vmem:[%s191_s5] sm:$0xff]   ;;  %vm355_vm2 = vcmask 64512  }
  0x6d   : > { %982 = vmatprep.mubr.msk.bf16.mxu0 %vm1387_vm0, %v1386_v0  ;;  %990 = vmatprep.mubr.msk.bf16.mxu1 %vm1387_vm0, %v1386_v0  ;;  %s935_s30 = sshll.u32 %s222_s27, 2  ;;  %v940_v11 = vld [vmem:[%s1772_s2] ss:$0 sm:$0xff]  ;;  %s1389_s23 = smov 112   ;;  %vm402_vm3 = vcmask 130048   ;;  %vm579_vm4 = vcmask 130112  }
  0x6e   : > { %246 = vrot.lane.b32.xlu0 %v1169_v1, %s1388_s25  ;;  %987 = vmatpush3.bf16.msra.mxu1 %v1169_v1  ;;  %s225_s11 = scalar_lea.vmem %s191_s5, %s935_s30 [#allocation2]  ;;  %s1390_s24 = smov 120   ;;  %vm694_vm5 = vcmask 195712   ;;  %vm809_vm6 = vcmask 261312  }
  0x6f   : > { %988 = vmatprep.subr.bf16.mxu1 %v1386_v0  ;;  %v226_v3 = vld [vmem:[%s225_s11] sm:$0xf]  ;;  %s1391_s8 = smov 104   ;;  %s1392_s9 = smov 80  }
  0x70   : > { %s1393_s20 = smov 72   ;;  %s1394_s12 = smov 88  }
  0x71   : > { %s215_s4 = sand.u32 1, %s1344_s13   ;;  %s1395_s5 = smov 8  }
  0x72   : > { %248 = vrot.lane.b32.xlu0 %v1170_v2, %s1388_s25  ;;  %989 = vmatpush3.bf16.msra.mxu1 %v1170_v2  ;;  %s933_s10 = sshll.u32 %s215_s4, 3  ;;  %s1396_s29 = smov 16  }
  0x73   : > { %1000 = vmatprep.subr.bf16.mxu1 %v1386_v0  ;;  %s1693_s6 = scalar_lea.vmem [#allocation7], %s933_s10  ;;  %s1397_s27 = smov 24  }
  0x74   : > { %s951_s30 = sshll.u32 %s1368_s19, 1  ;;  %s827_s15 = sshll.u32 %s1693_s6, 4  ;;  %s1707_s15 = int_to_ptr.vmem [resolvable:$true] %s827_s15 }
  0x75   : > { %991 = vmatmul.mubr.msk.bf16.vlgmr.msra.gmra.mrb[0].mxu1 %vm252_vm1, %v226_v3  ;;  %s812_s19 = scalar_lea.sflag [#allocation4], %s215_s4  ;;  %p1806_p7 = scmp.ne.s32.totalorder %s1791_s28, 0 }
  0x76   : > { %1002 = vmatprep.mubr.msk.bf16.mxu1 %vm1387_vm0, %v1386_v0 }
  0xe0   : > { %v247_v4 = vpop.permute.xlu0 %246 }
  0xe1   : > { %979 = vmatpush3.bf16.msra.mxu0 %v247_v4 }
  0xe2   : > { %980 = vmatprep.subr.bf16.mxu0 %v1386_v0 }
  0xe4   : > { %v249_v5 = vpop.permute.xlu0 %248 }
  0xe5   : > { %981 = vmatpush3.bf16.msra.mxu0 %v249_v5 }
  0xe6   : > { %994 = vmatprep.subr.bf16.mxu0 %v1386_v0 }
  0xe8   : > { %983 = vmatmul.mubr.msk.bf16.vlgmr.msra.gmra.mrb[0].mxu0 %vm252_vm1, %v1171_v6 }
  0xe9   : > { %996 = vmatprep.mubr.msk.bf16.mxu0 %vm1387_vm0, %v1386_v0 }
 0x148   : > { %v343_v7 = vpop.f32.mrb[0].mxu1 }
 0x149   : > { %v992_v8 = vpop.f32.mrb[1].mxu1  ;;  %v344_v12 = vadd.f32 %v940_v11, %v343_v7 }
 0x14a   : > { %v346_v9 = vpop.f32.mrb[2].mxu1 }
 0x14b   : > { %v993_v10 = vpop.f32.mrb[3].mxu1  ;;  %v349_v15 = vmul.f32 0.35355338, %v344_v12 }
 0x14d   : > { %v350_v22 = vpack.c.bf16 %v349_v15, %v349_v15 }
 0x1bb   : > { %v290_v13 = vpop.f32.mrb[0].mxu0 }
 0x1bc   : > { %v984_v14 = vpop.f32.mrb[1].mxu0  ;;  %v352_v17 = vadd.f32 %v940_v11, %v290_v13 }
 0x1bd   : > { %v293_v16 = vpop.f32.mrb[2].mxu0 }
 0x1be   : > { %v351_v18 = vpack.c.bf16 %v293_v16, %v290_v13  ;;  %v353_v19 = vadd.f32 %v940_v11, %v293_v16  ;;  %v985_v20 = vpop.f32.mrb[3].mxu0 }
 0x1c0   : > { %v1645_v21 = vpack.c.bf16 %v353_v19, %v352_v17  ;;  %583 = vrot.lane.b32.xlu0 %v351_v18, %s1389_s23  ;;  %468 = vrot.lane.b32.xlu1 %v351_v18, %s1390_s24  ;;  %v360_v23 = vsel %vm355_vm2, %v351_v18, 0 }
 0x1c1   : > { %995 = vmatpush3.bf16.xpose.msra.mxu0 %v360_v23 }
 0x1c2   : > { %1006 = vmatprep.subr.bf16.mxu0 %v1386_v0 }
 0x1c4   : > { %698 = vrot.lane.b32.xlu0 %v351_v18, %s1391_s8  ;;  %465 = vrot.lane.b32.xlu1 %v350_v22, %s1390_s24 }
 0x1c8   : > { %581 = vrot.lane.b32.xlu1 %v350_v22, %s1389_s23  ;;  %997 = vmatmul.mubr.msk.bf16.vlgmr.msra.gmra.mrb[4].mxu0 %vm355_vm2, %v350_v22 }
 0x1c9   : > { %1008 = vmatprep.mubr.msk.bf16.mxu0 %vm1387_vm0, %v1386_v0 }
 0x1cc   : > { %696 = vrot.lane.b32.xlu1 %v350_v22, %s1391_s8  ;;  %s1254_s8 = scalar_lea.vmem %s1707_s15, 128 }
 0x1cd   : > { %p1255_p4 = scmp.ne.s32.totalorder %s1707_s15, %s1254_s8 }
 0x1cf   : > { %p1256_p9 = pnand %p1255_p4, %p1806_p7 }
 0x1d0   : > { %414 = vrot.lane.b32.xlu1 %v1645_v21, %s1388_s25  ;;  %s823_s25 = sadd.s32 %s1364_s18, %s951_s30  ;;  %s1398_s18 = smov [#allocation7]  }
 0x1d1   : > { %s952_s11 = sshll.u32 %s823_s25, 7  ;;  %p1257_p11 = pneg %p1256_p9 }
 0x1d2   : > { %s1705_s24 = scalar_lea.hbm %s1773_s3, %s952_s11 }
 0x232   : > { %v469_v24 = vpop.permute.xlu1 %468  ;;  %v584_v27 = vpop.permute.xlu0 %583 }
 0x233   : > { %v474_v25 = vsel %vm355_vm2, %v469_v24, 0  ;;  %v589_v29 = vsel %vm355_vm2, %v584_v27, 0 }
 0x234   : > { %1007 = vmatpush3.bf16.xpose.msra.mxu0 %v474_v25 }
 0x235   : > { %1018 = vmatprep.subr.bf16.mxu0 %v1386_v0 }
 0x236   : > { %v466_v26 = vpop.permute.xlu1 %465  ;;  %v699_v31 = vpop.permute.xlu0 %698 }
 0x237   : > { %v704_v33 = vsel %vm355_vm2, %v699_v31, 0 }
 0x23a   : > { %v582_v28 = vpop.permute.xlu1 %581 }
 0x23b   : > { %1009 = vmatmul.mubr.msk.bf16.vlgmr.msra.gmra.mrb[8].mxu0 %vm355_vm2, %v466_v26 }
 0x23c   : > { %1019 = vmatpush3.bf16.xpose.msra.mxu0 %v589_v29  ;;  %1020 = vmatprep.mubr.msk.bf16.mxu0 %vm1387_vm0, %v1386_v0 }
 0x23d   : > { %1030 = vmatprep.subr.bf16.mxu0 %v1386_v0 }
 0x23e   : > { %v697_v30 = vpop.permute.xlu1 %696 }
 0x242   : > { %v415_v32 = vpop.permute.xlu1 %414 }
 0x243   : > { %1001 = vmatpush3.bf16.msra.mxu1 %v415_v32  ;;  %1021 = vmatmul.mubr.msk.bf16.vlgmr.msra.gmra.mrb[12].mxu0 %vm355_vm2, %v582_v28 }
 0x244   : > { %1031 = vmatpush3.bf16.xpose.msra.mxu0 %v704_v33  ;;  %1032 = vmatprep.mubr.msk.bf16.mxu0 %vm1387_vm0, %v1386_v0 }
 0x245   : > { %1012 = vmatprep.subr.bf16.mxu1 %v1386_v0 }
 0x24b   : > { %1033 = vmatmul.mubr.msk.bf16.vlgmr.msra.gmra.mrb[16].mxu0 %vm355_vm2, %v697_v30 }
 0x29b   : > { %v396_v34 = vpop.f32.mrb[4].mxu0 }
 0x29c   : > { %v998_v35 = vpop.f32.mrb[5].mxu0  ;;  %v403_v36 = vsel %vm402_vm3, %v396_v34, -inf }
 0x29d   : > { %404 = vmax.xlane.f32.xlu0 %v403_v36  ;;  %v399_v37 = vpop.f32.mrb[6].mxu0 }
 0x29e   : > { %v999_v38 = vpop.f32.mrb[7].mxu0 }
 0x30e   : > { %v510_v39 = vpop.f32.mrb[8].mxu0 }
 0x30f   : > { %v1010_v40 = vpop.f32.mrb[9].mxu0  ;;  %v516_v41 = vsel %vm402_vm3, %v510_v39, -inf }
 0x310   : > { %517 = vmax.xlane.f32.xlu1 %v516_v41  ;;  %v513_v42 = vpop.f32.mrb[10].mxu0 }
 0x311   : > { %v1011_v43 = vpop.f32.mrb[11].mxu0 }
 0x316   : > { %v625_v44 = vpop.f32.mrb[12].mxu0 }
 0x317   : > { %v1022_v45 = vpop.f32.mrb[13].mxu0  ;;  %v631_v46 = vsel %vm402_vm3, %v625_v44, -inf }
 0x318   : > { %632 = vmax.xlane.f32.xlu0 %v631_v46  ;;  %v628_v47 = vpop.f32.mrb[14].mxu0 }
 0x319   : > { %v1023_v48 = vpop.f32.mrb[15].mxu0 }
 0x31e   : > { %v740_v49 = vpop.f32.mrb[16].mxu0 }
 0x31f   : > { %v1034_v50 = vpop.f32.mrb[17].mxu0  ;;  %v746_v51 = vsel %vm402_vm3, %v740_v49, -inf }
 0x320   : > { %747 = vmax.xlane.f32.xlu0 %v746_v51  ;;  %v743_v52 = vpop.f32.mrb[18].mxu0 }
 0x321   : > { %641 = vrot.lane.b32.xlu1 %v1645_v21, %s1392_s9  ;;  %v1035_v53 = vpop.f32.mrb[19].mxu0  ;;  %s1258_s9 = sshll.u32 %s1398_s18, 4  ;;  %s1259_s9 = int_to_ptr.vmem [resolvable:$false] %s1258_s9 }
 0x322   : > { %p1261_p13 = scmp.lt.s32.totalorder %s1707_s15, %s1259_s9 }
 0x325   : > { %756 = vrot.lane.b32.xlu1 %v1645_v21, %s1393_s20  ;;  %s1260_s20 = scalar_lea.vmem %s1259_s9, 256 }
 0x326   : > { %p1262_p0 = scmp.lt.s32.totalorder %s1260_s20, %s1254_s8 }
 0x328   : > { %p1263_p2 = por %p1262_p0, %p1261_p13 }
 0x32a   : > { %v405_v54 = vpop.xlane.xlu0 %404  ;;  %p1264_p5 = pnand %p1263_p2, %p1257_p11 }
 0x32b   : > { %v406_v55 = vsub.f32 %v396_v34, %v405_v54 }
 0x32d   : > { %v407_v56 = vmul.f32 1.442695, %v406_v55 }
 0x32f   : > { %1172 = vpow2.f32 %v407_v56 }
 0x336   : > { %526 = vrot.lane.b32.xlu0 %v1645_v21, %s1394_s12 }
 0x339   : > { %v1173_v57 = vpop.eup %1172 }
 0x33a   : > { %v412_v58 = vpack.c.bf16 %v1173_v57, %v1173_v57  ;;  %v409_v16 = vsel %vm402_vm3, %v1173_v57, 0.0 }
 0x33c   : > { %1003 = vmatmul.mubr.msk.bf16.vlgmr.msra.gmra.mrb[4].mxu1 %vm402_vm3, %v412_v58 }
 0x33d   : > { %1014 = vmatprep.mubr.msk.bf16.mxu1 %vm1387_vm0, %v1386_v0 }
 0x39d   : > { %v518_v59 = vpop.xlane.xlu1 %517 }
 0x39e   : > { %v519_v60 = vsub.f32 %v510_v39, %v518_v59 }
 0x3a0   : > { %v520_v61 = vmul.f32 1.442695, %v519_v60 }
 0x3a1   : > { %v642_v10 = vpop.permute.xlu1 %641 }
 0x3a2   : > { %1174 = vpow2.f32 %v520_v61 }
 0x3a5   : > { %v633_v62 = vpop.xlane.xlu0 %632  ;;  %v757_v14 = vpop.permute.xlu1 %756 }
 0x3a6   : > { %v634_v63 = vsub.f32 %v625_v44, %v633_v62 }
 0x3a8   : > { %v635_v1 = vmul.f32 1.442695, %v634_v63 }
 0x3aa   : > { %1176 = vpow2.f32 %v635_v1 }
 0x3ac   : > { %v1175_v2 = vpop.eup %1174 }
 0x3ad   : > { %v748_v3 = vpop.xlane.xlu0 %747  ;;  %v522_v4 = vsel %vm402_vm3, %v1175_v2, 0.0  ;;  %v525_v8 = vpack.c.bf16 %v1175_v2, %v1175_v2 }
 0x3ae   : > { %v749_v5 = vsub.f32 %v740_v49, %v748_v3  ;;  %523 = vadd.xlane.f32.xlu0 %v522_v4 }
 0x3b0   : > { %v750_v6 = vmul.f32 1.442695, %v749_v5 }
 0x3b1   : > { %v527_v7 = vpop.permute.xlu0 %526 }
 0x3b2   : > { %1178 = vpow2.f32 %v750_v6  ;;  %1013 = vmatpush3.bf16.msra.mxu1 %v527_v7 }
 0x3b3   : > { %1024 = vmatprep.subr.bf16.mxu1 %v1386_v0 }
 0x3b4   : > { %v1177_v9 = vpop.eup %1176 }
 0x3b5   : > { %1015 = vmatmul.mubr.msk.bf16.vlgmr.msra.gmra.mrb[8].mxu1 %vm402_vm3, %v525_v8  ;;  %v637_v11 = vsel %vm402_vm3, %v1177_v9, 0.0  ;;  %v640_v12 = vpack.c.bf16 %v1177_v9, %v1177_v9 }
 0x3b6   : > { %638 = vadd.xlane.f32.xlu1 %v637_v11  ;;  %1025 = vmatpush3.bf16.msra.mxu1 %v642_v10 }
 0x3b7   : > { %1026 = vmatprep.mubr.msk.bf16.mxu1 %vm1387_vm0, %v1386_v0  ;;  %1036 = vmatprep.subr.bf16.mxu1 %v1386_v0 }
 0x3bc   : > { %v1179_v13 = vpop.eup %1178 }
 0x3bd   : > { %1027 = vmatmul.mubr.msk.bf16.vlgmr.msra.gmra.mrb[12].mxu1 %vm402_vm3, %v640_v12  ;;  %v752_v15 = vsel %vm402_vm3, %v1179_v13, 0.0  ;;  %v755_v17 = vpack.c.bf16 %v1179_v13, %v1179_v13 }
 0x3be   : > { %1037 = vmatpush3.bf16.msra.mxu1 %v757_v14  ;;  %753 = vadd.xlane.f32.xlu0 %v752_v15 }
 0x3bf   : > { %1038 = vmatprep.mubr.msk.bf16.mxu1 %vm1387_vm0, %v1386_v0 }
 0x3c2   : > { %410 = vadd.xlane.f32.xlu0 %v409_v16 }
 0x3c5   : > { %1039 = vmatmul.mubr.msk.bf16.vlgmr.msra.gmra.mrb[16].mxu1 %vm402_vm3, %v755_v17 }
 0x40f   : > { %v454_v18 = vpop.f32.mrb[4].mxu1 }
 0x410   : > { %v1004_v19 = vpop.f32.mrb[5].mxu1 }
 0x411   : > { %v457_v20 = vpop.f32.mrb[6].mxu1 }
 0x412   : > { %v1005_v21 = vpop.f32.mrb[7].mxu1 }
 0x43b   : > { %v524_v22 = vpop.xlane.xlu0 %523 }
 0x443   : > { %v639_v27 = vpop.xlane.xlu1 %638 }
 0x44b   : > { %v754_v23 = vpop.xlane.xlu0 %753 }
 0x44f   : > { %v411_v24 = vpop.xlane.xlu0 %410 }
 0x450   : > { %1180 = vrcp.f32 %v411_v24 }
 0x45a   : > { %v1181_v25 = vpop.eup %1180 }
 0x45b   : > { %v461_v26 = vmul.f32 %v1181_v25, %v454_v18 }
 0x45d   : > { %1182 = vtanh.f32 %v461_v26 }
 0x45e   : > { %1184 = vrcp.f32 %v524_v22 }
 0x45f   : > { %1186 = vrcp.f32 %v639_v27 }
 0x467   : > { %v1183_v0 = vpop.eup %1182 }
 0x468   : > { %463 = vst.msk [vmem:[%s1693_s6] sm:$0xff] %vm355_vm2, %v1183_v0  ;;  %v1185_v28 = vpop.eup %1184 }
 0x469   : > { %v1187_v34 = vpop.eup %1186 }
 0x488   : > { %v566_v29 = vpop.f32.mrb[8].mxu1 }
 0x489   : > { %v573_v30 = vmul.f32 %v1185_v28, %v566_v29  ;;  %v1016_v31 = vpop.f32.mrb[9].mxu1 }
 0x48a   : > { %v569_v32 = vpop.f32.mrb[10].mxu1 }
 0x48b   : > { %1188 = vtanh.f32 %v573_v30  ;;  %v1017_v33 = vpop.f32.mrb[11].mxu1 }
 0x48c   : > { %1190 = vrcp.f32 %v754_v23 }
 0x490   : > { %v681_v35 = vpop.f32.mrb[12].mxu1 }
 0x491   : > { %v688_v36 = vmul.f32 %v1187_v34, %v681_v35  ;;  %v1028_v37 = vpop.f32.mrb[13].mxu1 }
 0x492   : > { %v684_v38 = vpop.f32.mrb[14].mxu1 }
 0x493   : > { %1192 = vtanh.f32 %v688_v36  ;;  %v1029_v39 = vpop.f32.mrb[15].mxu1 }
 0x495   : > { %v1189_v40 = vpop.eup %1188 }
 0x496   : > { %576 = vrot.lane.b32.xlu1 %v1189_v40, %s1395_s5  ;;  %v1191_v41 = vpop.eup %1190 }
 0x498   : > { %v796_v42 = vpop.f32.mrb[16].mxu1 }
 0x499   : > { %v803_v43 = vmul.f32 %v1191_v41, %v796_v42  ;;  %v1040_v44 = vpop.f32.mrb[17].mxu1 }
 0x49a   : > { %v799_v45 = vpop.f32.mrb[18].mxu1 }
 0x49b   : > { %1194 = vtanh.f32 %v803_v43  ;;  %v1041_v46 = vpop.f32.mrb[19].mxu1 }
 0x49d   : > { %v1193_v47 = vpop.eup %1192 }
 0x49e   : > { %691 = vrot.lane.b32.xlu0 %v1193_v47, %s1396_s29 }
 0x4a5   : > { %v1195_v48 = vpop.eup %1194 }
 0x4a6   : > { %806 = vrot.lane.b32.xlu1 %v1195_v48, %s1397_s27 }
 0x508   : > { %v577_v49 = vpop.permute.xlu1 %576 }
 0x509   : > { %580 = vst.msk [vmem:[%s1693_s6] sm:$0xff] %vm579_vm4, %v577_v49 }
 0x510   : > { %v692_v50 = vpop.permute.xlu0 %691 }
 0x511   : > { %695 = vst.msk [vmem:[%s1693_s6] sm:$0xff] %vm694_vm5, %v692_v50 }
 0x518   : > { %v807_v51 = vpop.permute.xlu1 %806 }
 0x519   : > { %810 = vst.msk [vmem:[%s1693_s6] sm:$0xff] %vm809_vm6, %v807_v51 }
 0x51a   : > { %1267 = shalt.err (!%p1264_p5)
}
 0x51b   : > { %s1268_s12 = scalar_lea.hbm %s1705_s24, 128  ;;  %s1272_s6 = scalar_lea.hbm %s1773_s3, 512 }
 0x51c   : > { %p1269_p8 = scmp.ne.s32.totalorder %s1705_s24, %s1268_s12  ;;  %p1273_p6 = scmp.lt.u32.totalorder %s1705_s24, %s1773_s3 }
 0x51d   : > { %p1274_p10 = scmp.lt.u32.totalorder %s1272_s6, %s1268_s12  ;;  %p1276_p4 = scmp.lt.u32.totalorder %s1268_s12, %s1705_s24 }
 0x51e   : > { %p1270_p12 = pnand %p1269_p8, %p1806_p7 }
 0x51f   : > { %p1275_p3 = por %p1274_p10, %p1273_p6 }
 0x520   : > { %p1271_p1 = pneg %p1270_p12 }
 0x521   : > { %p1277_p9 = por %p1276_p4, %p1275_p3 }
 0x523   : > { %p1278_p11 = pnand %p1277_p9, %p1271_p1 }
 0x525   : > { %1281 = shalt.err (!%p1278_p11)
}
 0x526   : > { %1048 = dma.vmem_to_hbm [thread:$0]  (%p1806_p7), %s1707_s15, 128, %s1705_s24, %s812_s19  }
 0x527 PF: > { %s1807_s27 = sld [smem:[#allocation11_spill]]  ;;  %s1808_s30 = sld [smem:[#allocation13_spill]] }
 0x528   : > { %p1065_p13 = scmp.ge.s32.totalorder %s1380_s22, 2 }
 0x52d   : > { %s839_s25 = sand.u32 1, %s1807_s27   ;;  %p1809_p0 = scmp.ne.s32.totalorder %s1808_s30, 0 }
 0x52e   : > { %s840_s11 = scalar_lea.sflag [#allocation4], %s839_s25 }
 0x52f   : > { %p1059_p2 = pnand %p1065_p13, %p1809_p0 }
 0x531   : > { %1335 = dma.done.wait (!%p1059_p2), %s840_s11, 128  }
 0x532   : > { %1337 = vsyncadd (!%p1059_p2), %s840_s11, 4294967168  ;;  %s20_s22 = sadd.s32 1, %s1380_s22   ;;  %s1810_s18 = sld [smem:[#allocation12_spill]] }
 0x533   : > { %p17_p5 = scmp.ge.s32.totalorder %s20_s22, 6   ;;  %s1811_s20 = sld [smem:[#allocation14_spill]] }
 0x534   : > { %s1812_s28 = sld [smem:[#allocation15_spill]]  ;;  %s1813_s12 = smov %s1344_s13 }
 0x535   : > { %s1814_s13 = smov %s1348_s14  ;;  %s1815_s14 = smov %s1559_s1 }
 0x536   : > { %s1816_s15 = smov %s1356_s16  ;;  %s1817_s16 = smov %s1360_s17 }
 0x537   : > { %s1818_s17 = smov %s1554_s7  ;;  %s1819_s19 = smov %s1376_s21 }
 0x538   :  { %19 = sbr.rel (!%p17_p5) target bundleno = 12 (0xc), region = 82 }
 0x53a   : > { %s1820_s21 = smov %s1812_s28 }
 0x53f   :  { %845 = vsyncpa [#allocation3], 1 }
 0x540   :  { %847 = vsyncpa [#allocation3 + $0x1], 1 }
 0x541   :  { %848 = vsyncpa [#allocation6], 1 }
 0x542   :  { %849 = vsyncpa [#allocation4], 1 }
 0x543   :  { %851 = vsyncpa [#allocation4 + $0x1], 1 }

</bundles_post_ra>
